<compile_context>
chip_gen: v6e
topology: v6e:2x2x1
jax: 0.10.0
libtpu: 0.0.40
codegen_flags: <defaults>
</compile_context>

<pallas_src>
import functools

import jax
import jax.numpy as jnp
from jax.experimental import pallas as pl
from jax.experimental.pallas import tpu as pltpu

_LANE = 128
_SUBLANE = 8
_TB_CAP = 512  # max batch-tile rows; keeps f32 activations comfortably in VMEM


def _round_up(x, m):
    return (x + m - 1) // m * m


def qnetwork_kernel(x_ref, w1_ref, wslab_ref, b_ref, out_ref):
    """Fused 4-layer MLP on one (TB, Kp) batch tile.

    x_ref:     (TB, Kp)   f32 activations (cast to compute dtype in-kernel)
    w1_ref:    (Kp, W)    layer-1 weight, compute dtype
    wslab_ref: (3W, W)    layers 2/3/4 weights stacked row-wise, compute dtype
    b_ref:     (4,  W)    biases (f32), one row per layer
    out_ref:   (TB, W)    lane-dense padded output
    """
    cdt = w1_ref.dtype                # compute dtype fed to the MXU (f32/bf16)
    W = wslab_ref.shape[1]

    # Layer 1: (TB, Kp) @ (Kp, W); f32 accumulate, bias+ReLU in f32.
    h = jnp.dot(x_ref[...].astype(cdt), w1_ref[...],
                preferred_element_type=jnp.float32)
    h = jnp.maximum(h + b_ref[0:1, :], 0.0)

    # Layer 2: (TB, W) @ (W, W)
    h = jnp.dot(h.astype(cdt), wslab_ref[0:W, :],
                preferred_element_type=jnp.float32)
    h = jnp.maximum(h + b_ref[1:2, :], 0.0)

    # Layer 3: (TB, W) @ (W, W)  (original 64-wide layer, zero-padded to W)
    h = jnp.dot(h.astype(cdt), wslab_ref[W:2 * W, :],
                preferred_element_type=jnp.float32)
    h = jnp.maximum(h + b_ref[2:3, :], 0.0)

    # Layer 4: (TB, W) @ (W, W) -> lane-dense store.
    h = jnp.dot(h.astype(cdt), wslab_ref[2 * W:3 * W, :],
                preferred_element_type=jnp.float32)
    out_ref[...] = (h + b_ref[3:4, :]).astype(out_ref.dtype)


def init_qnetwork_params(key, state_size, action_size, fc_units=128):
    """PyTorch-Linear-like init (uniform +-1/sqrt(fan_in)); weights stored as
    (in_features, out_features), biases (1, out). Unpadded, f32."""
    dims = [(state_size, fc_units),
            (fc_units, fc_units),
            (fc_units, fc_units // 2),
            (fc_units // 2, action_size)]
    params = {}
    for i, (fan_in, fan_out) in enumerate(dims, start=1):
        key, kw, kb = jax.random.split(key, 3)
        bound = 1.0 / jnp.sqrt(jnp.float32(fan_in))
        params[f"w{i}"] = jax.random.uniform(
            kw, (fan_in, fan_out), jnp.float32, -bound, bound)
        params[f"b{i}"] = jax.random.uniform(
            kb, (1, fan_out), jnp.float32, -bound, bound)
    return params


def prepare_params(params, compute_dtype=jnp.float32):
    """Pad/pack params for the kernel (done once, not per call).

    * All hidden/output widths padded to one lane-dense width W (multiple of
      128): every MXU contraction is full-width, every intermediate and the
      final store are lane-dense.  Zero pad columns + zero biases stay zero
      through ReLU, so results are numerically identical.
    * K (state) dim padded to a multiple of 8 (f32) or 16 (bf16 packs two
      rows per sublane).
    * w2/w3/w4 concatenated into one (3W, W) slab, biases stacked to (4, W):
      4 input DMAs per call instead of 9.
    * Weights cast to compute_dtype.  bf16 is supported on v5e/v6e/v7x: the
      MXU takes bf16 inputs and accumulates in f32; bias+ReLU stays f32.
    """
    state_size, h1 = params["w1"].shape
    h2 = params["w2"].shape[1]
    h3 = params["w3"].shape[1]
    action_size = params["w4"].shape[1]

    cdt = jnp.dtype(compute_dtype)
    k_align = 16 if cdt.itemsize == 2 else _SUBLANE
    k_pad = _round_up(state_size, k_align)
    W = max(_round_up(d, _LANE) for d in (h1, h2, h3, action_size))

    def pad2(a, rows, cols):
        return jnp.pad(a, ((0, rows - a.shape[0]), (0, cols - a.shape[1])))

    w1 = pad2(params["w1"], k_pad, W).astype(compute_dtype)
    wslab = jnp.concatenate(
        [pad2(params["w2"], W, W),
         pad2(params["w3"], W, W),
         pad2(params["w4"], W, W)], axis=0).astype(compute_dtype)
    biases = jnp.concatenate(
        [pad2(params[f"b{i}"], 1, W) for i in (1, 2, 3, 4)],
        axis=0).astype(jnp.float32)

    return {"w1": w1, "wslab": wslab, "b": biases}


def default_num_tiles(batch):
    """2 on v7x (two TensorCores/chip) for non-tiny batches, else 1."""
    try:
        kind = jax.devices()[0].device_kind.lower()
    except Exception:  # pragma: no cover - defensive
        kind = ""
    if ("v7" in kind or "7x" in kind) and batch >= 64:
        return 2
    return 1


@functools.partial(jax.jit,
                   static_argnames=("action_size", "num_tiles", "out_dtype"))
def qnetwork_forward(state, kparams, action_size, num_tiles=1,
                     out_dtype=jnp.float32):
    """state: (batch, state_size) f32; kparams: output of prepare_params."""
    batch, state_size = state.shape
    k_pad, W = kparams["w1"].shape

    # Batch tiling: one grid step for typical DQN batches (or exactly
    # `num_tiles` steps, e.g. 2 on v7x so each TensorCore gets one tile).
    # _TB_CAP keeps huge batches pipelined.
    tb = _round_up(pl.cdiv(batch, num_tiles), _SUBLANE)
    tb = min(tb, _TB_CAP)
    padded_batch = _round_up(batch, tb)
    grid = (padded_batch // tb,)

    # Zero-pad batch rows and the K (state) dim.  x stays f32: the bf16 cast
    # (if any) happens inside the kernel, avoiding an extra HBM pass over x.
    x = jnp.pad(state, ((0, padded_batch - batch), (0, k_pad - state_size)))

    cd_bytes = jnp.dtype(kparams["w1"].dtype).itemsize
    out_bytes = jnp.dtype(out_dtype).itemsize
    flops = 2 * padded_batch * (k_pad * W + 3 * W * W)
    bytes_accessed = (padded_batch * k_pad * 4            # x in (f32)
                      + padded_batch * W * out_bytes      # out
                      + (k_pad * W + 3 * W * W) * cd_bytes  # resident weights
                      + 4 * W * 4)                        # biases (f32)

    const = lambda i: (0, 0)  # weights/biases: same block every step -> resident
    in_specs = [
        pl.BlockSpec((tb, k_pad), lambda i: (i, 0)),  # activation tile
        pl.BlockSpec((k_pad, W), const),              # w1
        pl.BlockSpec((3 * W, W), const),              # w2|w3|w4 slab
        pl.BlockSpec((4, W), const),                  # stacked biases
    ]
    out_spec = pl.BlockSpec((tb, W), lambda i: (i, 0))

    out = pl.pallas_call(
        qnetwork_kernel,
        out_shape=jax.ShapeDtypeStruct((padded_batch, W), out_dtype),
        grid=grid,
        in_specs=in_specs,
        out_specs=out_spec,
        compiler_params=pltpu.CompilerParams(
            dimension_semantics=("parallel",)),   # megacore sharding on v7x
        cost_estimate=pl.CostEstimate(
            flops=flops, transcendentals=0, bytes_accessed=bytes_accessed),
    )(x, kparams["w1"], kparams["wslab"], kparams["b"])

    # Strip the batch / output-lane padding.
    return out[:batch, :action_size]


def qnetwork_ref(state, params):
    """Pure-JAX f32 reference on the original (unpadded) parameters."""
    h = jnp.maximum(state @ params["w1"] + params["b1"], 0.0)
    h = jnp.maximum(h @ params["w2"] + params["b2"], 0.0)
    h = jnp.maximum(h @ params["w3"] + params["b3"], 0.0)
    return h @ params["w4"] + params["b4"]


if __name__ == "__main__":
    # Banana-navigation-like sizes: state_size=37, action_size=4, fc_units=128.
    state_size, action_size, fc_units = 37, 4, 128

    key = jax.random.PRNGKey(0)
    k_params, k_small, k_big = jax.random.split(key, 3)
    params = init_qnetwork_params(k_params, state_size, action_size, fc_units)

    # --- f32 path, tiny inference-style batch (action selection) -----------
    kp_f32 = prepare_params(params, jnp.float32)
    state_small = jax.random.normal(k_small, (2, state_size), jnp.float32)
    out_small = jax.block_until_ready(
        qnetwork_forward(state_small, kp_f32, action_size))
    ref_small = qnetwork_ref(state_small, params)
    assert out_small.shape == (2, action_size)
    assert jnp.allclose(out_small, ref_small, atol=1e-5, rtol=1e-5)

    # --- f32 path, training-size batch (runs in 1 grid step; 2 on v7x) -----
    batch = 300
    num_tiles = default_num_tiles(batch)
    state_big = jax.random.normal(k_big, (batch, state_size), jnp.float32)
    out_big = jax.block_until_ready(
        qnetwork_forward(state_big, kp_f32, action_size, num_tiles=num_tiles))
    ref_big = qnetwork_ref(state_big, params)
    assert out_big.shape == (batch, action_size)
    assert jnp.allclose(out_big, ref_big, atol=1e-4, rtol=1e-4)

    # --- bf16 weight path (valid on v5e/v6e/v7x; f32 MXU accumulation) -----
    kp_bf16 = prepare_params(params, jnp.bfloat16)
    out_bf16 = jax.block_until_ready(
        qnetwork_forward(state_big, kp_bf16, action_size, num_tiles=num_tiles))
    assert out_bf16.shape == (batch, action_size)
    # Loose tolerance vs the f32 reference: bf16 input rounding only.
    assert jnp.allclose(out_bf16, ref_big, atol=1e-1, rtol=1e-1)

    print("KERNEL_OK")
</pallas_src>

<mosaic_0001>
module attributes {stable_mosaic.version = 11 : i64} {
  func.func @qnetwork_kernel(%arg0: i32, %arg1: memref<8x40xf32, #tpu.memory_space<vmem>>, %arg2: memref<40x128xf32, #tpu.memory_space<vmem>>, %arg3: memref<384x128xf32, #tpu.memory_space<vmem>>, %arg4: memref<4x128xf32, #tpu.memory_space<vmem>>, %arg5: memref<8x128xf32, #tpu.memory_space<vmem>>) attributes {dimension_semantics = [#tpu.dimension_semantics<parallel>], iteration_bounds = array<i64: 1>, scalar_prefetch = 0 : i64, scratch_operands = 0 : i64, tpu.core_type = #tpu.core_type<tc>, window_params = [{transform_indices = @transform_0, window_bounds = array<i64: 8, 40>}, {pipeline_mode = #tpu.pipeline_mode<synchronous>, transform_indices = @transform_1, window_bounds = array<i64: 40, 128>}, {pipeline_mode = #tpu.pipeline_mode<synchronous>, transform_indices = @transform_2, window_bounds = array<i64: 384, 128>}, {pipeline_mode = #tpu.pipeline_mode<synchronous>, transform_indices = @transform_3, window_bounds = array<i64: 4, 128>}, {transform_indices = @transform_4, window_bounds = array<i64: 8, 128>}]} {
    %c0 = arith.constant 0 : index
    %c0_0 = arith.constant 0 : index
    %0 = vector.load %arg1[%c0, %c0_0] : memref<8x40xf32, #tpu.memory_space<vmem>>, vector<8x40xf32>
    %c0_1 = arith.constant 0 : index
    %c0_2 = arith.constant 0 : index
    %1 = vector.load %arg2[%c0_1, %c0_2] : memref<40x128xf32, #tpu.memory_space<vmem>>, vector<40x128xf32>
    %cst = arith.constant dense<0.000000e+00> : vector<8x128xf32>
    %2 = tpu.matmul %0, %1, %cst {dimension_numbers = #tpu.dot_dimension_numbers<[1], [0], [0], [1], [0, 0, 1, 1], [], []>} : vector<8x40xf32>, vector<40x128xf32>, vector<8x128xf32> -> vector<8x128xf32>
    %c0_3 = arith.constant 0 : index
    %c0_4 = arith.constant 0 : index
    %3 = vector.load %arg4[%c0_3, %c0_4] : memref<4x128xf32, #tpu.memory_space<vmem>>, vector<1x128xf32>
    %4 = vector.broadcast %3 : vector<1x128xf32> to vector<8x128xf32>
    %5 = arith.addf %2, %4 : vector<8x128xf32>
    %cst_5 = arith.constant 0.000000e+00 : f32
    %6 = vector.broadcast %cst_5 : f32 to vector<8x128xf32>
    %7 = arith.maximumf %5, %6 : vector<8x128xf32>
    %c0_6 = arith.constant 0 : index
    %c0_7 = arith.constant 0 : index
    %8 = vector.load %arg3[%c0_6, %c0_7] : memref<384x128xf32, #tpu.memory_space<vmem>>, vector<128x128xf32>
    %cst_8 = arith.constant dense<0.000000e+00> : vector<8x128xf32>
    %9 = tpu.matmul %7, %8, %cst_8 {dimension_numbers = #tpu.dot_dimension_numbers<[1], [0], [0], [1], [0, 0, 1, 1], [], []>} : vector<8x128xf32>, vector<128x128xf32>, vector<8x128xf32> -> vector<8x128xf32>
    %c1 = arith.constant 1 : index
    %c0_9 = arith.constant 0 : index
    %10 = vector.load %arg4[%c1, %c0_9] : memref<4x128xf32, #tpu.memory_space<vmem>>, vector<1x128xf32>
    %11 = vector.broadcast %10 : vector<1x128xf32> to vector<8x128xf32>
    %12 = arith.addf %9, %11 : vector<8x128xf32>
    %cst_10 = arith.constant 0.000000e+00 : f32
    %13 = vector.broadcast %cst_10 : f32 to vector<8x128xf32>
    %14 = arith.maximumf %12, %13 : vector<8x128xf32>
    %c128 = arith.constant 128 : index
    %c0_11 = arith.constant 0 : index
    %15 = vector.load %arg3[%c128, %c0_11] : memref<384x128xf32, #tpu.memory_space<vmem>>, vector<128x128xf32>
    %cst_12 = arith.constant dense<0.000000e+00> : vector<8x128xf32>
    %16 = tpu.matmul %14, %15, %cst_12 {dimension_numbers = #tpu.dot_dimension_numbers<[1], [0], [0], [1], [0, 0, 1, 1], [], []>} : vector<8x128xf32>, vector<128x128xf32>, vector<8x128xf32> -> vector<8x128xf32>
    %c2 = arith.constant 2 : index
    %c0_13 = arith.constant 0 : index
    %17 = vector.load %arg4[%c2, %c0_13] : memref<4x128xf32, #tpu.memory_space<vmem>>, vector<1x128xf32>
    %18 = vector.broadcast %17 : vector<1x128xf32> to vector<8x128xf32>
    %19 = arith.addf %16, %18 : vector<8x128xf32>
    %cst_14 = arith.constant 0.000000e+00 : f32
    %20 = vector.broadcast %cst_14 : f32 to vector<8x128xf32>
    %21 = arith.maximumf %19, %20 : vector<8x128xf32>
    %c256 = arith.constant 256 : index
    %c0_15 = arith.constant 0 : index
    %22 = vector.load %arg3[%c256, %c0_15] : memref<384x128xf32, #tpu.memory_space<vmem>>, vector<128x128xf32>
    %cst_16 = arith.constant dense<0.000000e+00> : vector<8x128xf32>
    %23 = tpu.matmul %21, %22, %cst_16 {dimension_numbers = #tpu.dot_dimension_numbers<[1], [0], [0], [1], [0, 0, 1, 1], [], []>} : vector<8x128xf32>, vector<128x128xf32>, vector<8x128xf32> -> vector<8x128xf32>
    %c3 = arith.constant 3 : index
    %c0_17 = arith.constant 0 : index
    %24 = vector.load %arg4[%c3, %c0_17] : memref<4x128xf32, #tpu.memory_space<vmem>>, vector<1x128xf32>
    %25 = vector.broadcast %24 : vector<1x128xf32> to vector<8x128xf32>
    %26 = arith.addf %23, %25 : vector<8x128xf32>
    %c0_18 = arith.constant 0 : index
    %c0_19 = arith.constant 0 : index
    %27 = vector.load %arg5[%c0_18, %c0_19] : memref<8x128xf32, #tpu.memory_space<vmem>>, vector<8x128xf32>
    tpu.vector_store %arg5[%c0_18, %c0_19], %26 {strides = array<i32>} : memref<8x128xf32, #tpu.memory_space<vmem>>, vector<8x128xf32>,
    return
  }
  func.func @transform_0(%arg0: i32) -> (i32, i32) {
    %c0_i32 = arith.constant 0 : i32
    %c0_i32_0 = arith.constant 0 : i32
    return %arg0, %c0_i32 : i32, i32
  }
  func.func @transform_1(%arg0: i32) -> (i32, i32) {
    %c0_i32 = arith.constant 0 : i32
    %c0_i32_0 = arith.constant 0 : i32
    %c0_i32_1 = arith.constant 0 : i32
    return %c0_i32, %c0_i32_0 : i32, i32
  }
  func.func @transform_2(%arg0: i32) -> (i32, i32) {
    %c0_i32 = arith.constant 0 : i32
    %c0_i32_0 = arith.constant 0 : i32
    %c0_i32_1 = arith.constant 0 : i32
    return %c0_i32, %c0_i32_0 : i32, i32
  }
  func.func @transform_3(%arg0: i32) -> (i32, i32) {
    %c0_i32 = arith.constant 0 : i32
    %c0_i32_0 = arith.constant 0 : i32
    %c0_i32_1 = arith.constant 0 : i32
    return %c0_i32, %c0_i32_0 : i32, i32
  }
  func.func @transform_4(%arg0: i32) -> (i32, i32) {
    %c0_i32 = arith.constant 0 : i32
    %c0_i32_0 = arith.constant 0 : i32
    return %arg0, %c0_i32 : i32, i32
  }
}

</mosaic_0001>

<bundles_post_ra>
// kernel: qnetwork_forward.1
= control target key start
LH: loop header
LB: loop body
LE: loop exit
PB: predicated region body
PF: predicated region fallthrough
CT: control target
= control target key end

     0   :  { %9 = vsyncpa [#allocation3], 0  ;;  %s759_s0 = inlined_call_operand.vmem [shape: f32[8,40], index: 0, kind: input, shape index: {}]   ;;  %s760_s1 = inlined_call_operand.hbm [shape: f32[40,128], index: 1, kind: input, shape index: {}]   ;;  %s761_s2 = inlined_call_operand.hbm [shape: f32[384,128], index: 2, kind: input, shape index: {}]   ;;  %s762_s3 = inlined_call_operand.vmem [shape: f32[4,128], index: 3, kind: input, shape index: {}]   ;;  %s763_s4 = inlined_call_operand.vmem [shape: f32[8,128], index: 4, kind: output, shape index: {}]  }
   0x1   :  { %10 = vsyncpa [#allocation5], 0  ;;  %s643_s15 = smov [#allocation2]  }
   0x2   :  { %s18_s16 = sshll.u32 %s643_s15, 4  ;;  %s19_s16 = int_to_ptr.vmem [resolvable:$true] %s18_s16 }
   0x3   :  { %s607_s17 = scalar_lea.vmem %s19_s16, 640  ;;  %p612_p1 = scmp.lt.s32.totalorder %s19_s16, %s19_s16 }
   0x4   :  { %p608_p0 = scmp.ne.s32.totalorder %s19_s16, %s607_s17  ;;  %p613_p2 = scmp.lt.s32.totalorder %s607_s17, %s607_s17 }
   0x6   :  { %p614_p3 = por %p613_p2, %p612_p1 }
   0x8   :  { %p615_p4 = pnand %p614_p3, %p608_p0 }
   0xa   :  { %618 = shalt.err (!%p615_p4)
}
   0xb   :  { %s644_s18 = smov 128   ;;  %s645_s19 = smov 8  }
   0xc   :  { %24 = dma.hbm_to_vmem [thread:$0]  %s760_s1, 640, %s19_s16, [#allocation3], %s644_s18, %s644_s18, %s645_s19  }
   0xd   :  { %s646_s22 = smov [#allocation4]  }
   0xe   :  { %s30_s23 = sshll.u32 %s646_s22, 4  ;;  %s31_s23 = int_to_ptr.vmem [resolvable:$true] %s30_s23 }
   0xf   :  { %s627_s24 = scalar_lea.vmem %s31_s23, 6144  ;;  %p632_p6 = scmp.lt.s32.totalorder %s31_s23, %s31_s23 }
  0x10   :  { %p628_p5 = scmp.ne.s32.totalorder %s31_s23, %s627_s24  ;;  %p633_p7 = scmp.lt.s32.totalorder %s627_s24, %s627_s24 }
  0x12   :  { %p634_p8 = por %p633_p7, %p632_p6 }
  0x14   :  { %p635_p9 = pnand %p634_p8, %p628_p5 }
  0x16   :  { %638 = shalt.err (!%p635_p9)
}
  0x17   :  { %36 = dma.hbm_to_vmem [thread:$0]  %s761_s2, 6144, %s31_s23, [#allocation5], %s644_s18, %s644_s18, %s645_s19  }
  0x18   :  { %639 = dma.done.wait [#allocation3], 640  }
  0x19   :  { %640 = vsyncadd [#allocation3], 4294966656 }
  0x1a   :  { %641 = dma.done.wait [#allocation5], 6144  }
  0x1b   :  { %642 = vsyncadd [#allocation5], 4294961152  ;;  %v647_v0 = vmov 0.0   ;;  %vm648_vm0 = vmmov 0   ;;  %v50_v1 = vld [vmem:[#allocation2 + $0x20] sm:$0xff]  ;;  %v49_v2 = vld [vmem:[#allocation2 + $0x18] sm:$0xff] }
  0x1c   :  { %475 = vmatprep.subr.mxu0 %v647_v0  ;;  %485 = vmatprep.mubr.msk.f32.mxu0 %vm648_vm0, %v647_v0  ;;  %v48_v3 = vld [vmem:[#allocation2 + $0x10] sm:$0xff]  ;;  %v146_v4 = vld [vmem:[#allocation4 + $0x78] sm:$0xff]  ;;  %v145_v5 = vld [vmem:[#allocation4 + $0x70] sm:$0xff]  ;;  %vm56_vm1 = vcmask 326656  }
  0x1d   :  { %488 = vmatprep.subr.mxu1 %v647_v0  ;;  %520 = vmatprep.mubr.msk.f32.mxu1 %vm648_vm0, %v647_v0  ;;  %v47_v6 = vld [vmem:[#allocation2 + $0x8] sm:$0xff]  ;;  %v144_v7 = vld [vmem:[#allocation4 + $0x68] sm:$0xff]  ;;  %v46_v8 = vld [vmem:[#allocation2] sm:$0xff] }
  0x1e   :  { %476 = vmatpush3.msra.mxu0 %v50_v1  ;;  %489 = vmatpush3.msra.mxu1 %v146_v4  ;;  %v143_v9 = vld [vmem:[#allocation4 + $0x60] sm:$0xff]  ;;  %v45_v10 = vld [vmem:[%s759_s0] sm:$0xff]  ;;  %v141_v12 = vld [vmem:[#allocation4 + $0x50] sm:$0xff] }
  0x1f   :  { %477 = vmatprep.subr.mxu0 %v647_v0  ;;  %490 = vmatprep.subr.mxu1 %v647_v0  ;;  %v142_v11 = vld [vmem:[#allocation4 + $0x58] sm:$0xff]  ;;  %v140_v13 = vld [vmem:[#allocation4 + $0x48] sm:$0xff]  ;;  %v139_v14 = vld [vmem:[#allocation4 + $0x40] sm:$0xff] }
  0x20   :  { %478 = vmatpush3.msra.mxu0 %v49_v2  ;;  %491 = vmatpush3.msra.mxu1 %v145_v5  ;;  %v138_v15 = vld [vmem:[#allocation4 + $0x38] sm:$0xff]  ;;  %v137_v16 = vld [vmem:[#allocation4 + $0x30] sm:$0xff]  ;;  %v136_v17 = vld [vmem:[#allocation4 + $0x28] sm:$0xff] }
  0x21   :  { %479 = vmatprep.subr.mxu0 %v647_v0  ;;  %492 = vmatprep.subr.mxu1 %v647_v0  ;;  %v135_v18 = vld [vmem:[#allocation4 + $0x20] sm:$0xff]  ;;  %v134_v19 = vld [vmem:[#allocation4 + $0x18] sm:$0xff]  ;;  %v133_v20 = vld [vmem:[#allocation4 + $0x10] sm:$0xff] }
  0x22   :  { %480 = vmatpush3.msra.mxu0 %v48_v3  ;;  %493 = vmatpush3.msra.mxu1 %v144_v7  ;;  %v132_v21 = vld [vmem:[#allocation4 + $0x8] sm:$0xff]  ;;  %v131_v22 = vld [vmem:[#allocation4] sm:$0xff]  ;;  %v238_v23 = vld [vmem:[#allocation4 + $0xf8] sm:$0xff] }
  0x23   :  { %481 = vmatprep.subr.mxu0 %v647_v0  ;;  %494 = vmatprep.subr.mxu1 %v647_v0  ;;  %v237_v24 = vld [vmem:[#allocation4 + $0xf0] sm:$0xff]  ;;  %v236_v25 = vld [vmem:[#allocation4 + $0xe8] sm:$0xff]  ;;  %v235_v26 = vld [vmem:[#allocation4 + $0xe0] sm:$0xff] }
  0x24   :  { %482 = vmatpush3.msra.mxu0 %v47_v6  ;;  %495 = vmatpush3.msra.mxu1 %v143_v9  ;;  %v234_v27 = vld [vmem:[#allocation4 + $0xd8] sm:$0xff]  ;;  %v233_v28 = vld [vmem:[#allocation4 + $0xd0] sm:$0xff]  ;;  %v232_v29 = vld [vmem:[#allocation4 + $0xc8] sm:$0xff] }
  0x25   :  { %483 = vmatprep.subr.mxu0 %v647_v0  ;;  %496 = vmatprep.subr.mxu1 %v647_v0  ;;  %v231_v30 = vld [vmem:[#allocation4 + $0xc0] sm:$0xff]  ;;  %v230_v31 = vld [vmem:[#allocation4 + $0xb8] sm:$0xff]  ;;  %v229_v32 = vld [vmem:[#allocation4 + $0xb0] sm:$0xff] }
  0x26   :  { %484 = vmatpush3.msra.mxu0 %v46_v8  ;;  %497 = vmatpush3.msra.mxu1 %v142_v11  ;;  %v228_v33 = vld [vmem:[#allocation4 + $0xa8] sm:$0xff]  ;;  %v227_v34 = vld [vmem:[#allocation4 + $0xa0] sm:$0xff]  ;;  %v226_v35 = vld [vmem:[#allocation4 + $0x98] sm:$0xff] }
  0x27   :  { %486 = vmatmul.mubr.msk.f32.vlgmr.msra.gmra.mxu0 %vm56_vm1, %v45_v10  ;;  %523 = vmatprep.subr.mxu0 %v647_v0  ;;  %v413_v36 = vld [vmem:[%s762_s3] ss:$0 sm:$0xff]  ;;  %v225_v41 = vld [vmem:[#allocation4 + $0x90] sm:$0xff]  ;;  %v224_v42 = vld [vmem:[#allocation4 + $0x88] sm:$0xff] }
  0x28   :  { %498 = vmatprep.subr.mxu1 %v647_v0  ;;  %555 = vmatprep.mubr.msk.f32.mxu0 %vm648_vm0, %v647_v0  ;;  %v223_v43 = vld [vmem:[#allocation4 + $0x80] sm:$0xff]  ;;  %v330_v44 = vld [vmem:[#allocation4 + $0x178] sm:$0xff]  ;;  %v329_v45 = vld [vmem:[#allocation4 + $0x170] sm:$0xff] }
  0x29   :  { %499 = vmatpush3.msra.mxu1 %v141_v12  ;;  %524 = vmatpush3.msra.mxu0 %v238_v23  ;;  %v328_v46 = vld [vmem:[#allocation4 + $0x168] sm:$0xff]  ;;  %v327_v47 = vld [vmem:[#allocation4 + $0x160] sm:$0xff]  ;;  %v326_v48 = vld [vmem:[#allocation4 + $0x158] sm:$0xff] }
  0x2a   :  { %500 = vmatprep.subr.mxu1 %v647_v0  ;;  %525 = vmatprep.subr.mxu0 %v647_v0  ;;  %v325_v49 = vld [vmem:[#allocation4 + $0x150] sm:$0xff]  ;;  %v324_v50 = vld [vmem:[#allocation4 + $0x148] sm:$0xff]  ;;  %v323_v51 = vld [vmem:[#allocation4 + $0x140] sm:$0xff] }
  0x2b   :  { %501 = vmatpush3.msra.mxu1 %v140_v13  ;;  %526 = vmatpush3.msra.mxu0 %v237_v24  ;;  %v322_v52 = vld [vmem:[#allocation4 + $0x138] sm:$0xff]  ;;  %v321_v53 = vld [vmem:[#allocation4 + $0x130] sm:$0xff]  ;;  %v320_v54 = vld [vmem:[#allocation4 + $0x128] sm:$0xff] }
  0x2c   :  { %502 = vmatprep.subr.mxu1 %v647_v0  ;;  %527 = vmatprep.subr.mxu0 %v647_v0  ;;  %v319_v55 = vld [vmem:[#allocation4 + $0x120] sm:$0xff]  ;;  %v318_v56 = vld [vmem:[#allocation4 + $0x118] sm:$0xff]  ;;  %v317_v62 = vld [vmem:[#allocation4 + $0x110] sm:$0xff] }
  0x2d   :  { %503 = vmatpush3.msra.mxu1 %v139_v14  ;;  %528 = vmatpush3.msra.mxu0 %v236_v25  ;;  %v415_v57 = vld [vmem:[%s762_s3 + $0x1] ss:$0 sm:$0xff]  ;;  %v316_v63 = vld [vmem:[#allocation4 + $0x108] sm:$0xff]  ;;  %v315_v1 = vld [vmem:[#allocation4 + $0x100] sm:$0xff] }
  0x2e   :  { %504 = vmatprep.subr.mxu1 %v647_v0  ;;  %529 = vmatprep.subr.mxu0 %v647_v0  ;;  %v416_v2 = vld [vmem:[%s762_s3 + $0x2] ss:$0 sm:$0xff]  ;;  %v417_v7 = vld [vmem:[%s762_s3 + $0x3] ss:$0 sm:$0xff] }
  0x2f   :  { %505 = vmatpush3.msra.mxu1 %v138_v15  ;;  %530 = vmatpush3.msra.mxu0 %v235_v26 }
  0x30   :  { %506 = vmatprep.subr.mxu1 %v647_v0  ;;  %531 = vmatprep.subr.mxu0 %v647_v0 }
  0x31   :  { %507 = vmatpush3.msra.mxu1 %v137_v16  ;;  %532 = vmatpush3.msra.mxu0 %v234_v27 }
  0x32   :  { %508 = vmatprep.subr.mxu1 %v647_v0  ;;  %533 = vmatprep.subr.mxu0 %v647_v0 }
  0x33   :  { %509 = vmatpush3.msra.mxu1 %v136_v17  ;;  %534 = vmatpush3.msra.mxu0 %v233_v28 }
  0x34   :  { %510 = vmatprep.subr.mxu1 %v647_v0  ;;  %535 = vmatprep.subr.mxu0 %v647_v0 }
  0x35   :  { %511 = vmatpush3.msra.mxu1 %v135_v18  ;;  %536 = vmatpush3.msra.mxu0 %v232_v29 }
  0x36   :  { %512 = vmatprep.subr.mxu1 %v647_v0  ;;  %537 = vmatprep.subr.mxu0 %v647_v0 }
  0x37   :  { %513 = vmatpush3.msra.mxu1 %v134_v19  ;;  %538 = vmatpush3.msra.mxu0 %v231_v30 }
  0x38   :  { %514 = vmatprep.subr.mxu1 %v647_v0  ;;  %539 = vmatprep.subr.mxu0 %v647_v0 }
  0x39   :  { %515 = vmatpush3.msra.mxu1 %v133_v20  ;;  %540 = vmatpush3.msra.mxu0 %v230_v31 }
  0x3a   :  { %516 = vmatprep.subr.mxu1 %v647_v0  ;;  %541 = vmatprep.subr.mxu0 %v647_v0 }
  0x3b   :  { %517 = vmatpush3.msra.mxu1 %v132_v21  ;;  %542 = vmatpush3.msra.mxu0 %v229_v32 }
  0x3c   :  { %518 = vmatprep.subr.mxu1 %v647_v0  ;;  %543 = vmatprep.subr.mxu0 %v647_v0 }
  0x3d   :  { %519 = vmatpush3.msra.mxu1 %v131_v22  ;;  %544 = vmatpush3.msra.mxu0 %v228_v33 }
  0x3e   :  { %558 = vmatprep.subr.mxu1 %v647_v0  ;;  %545 = vmatprep.subr.mxu0 %v647_v0 }
  0x3f   :  { %546 = vmatpush3.msra.mxu0 %v227_v34 }
  0x40   :  { %547 = vmatprep.subr.mxu0 %v647_v0 }
  0x41   :  { %548 = vmatpush3.msra.mxu0 %v226_v35 }
  0x42   :  { %549 = vmatprep.subr.mxu0 %v647_v0 }
  0x43   :  { %550 = vmatpush3.msra.mxu0 %v225_v41 }
  0x44   :  { %551 = vmatprep.subr.mxu0 %v647_v0 }
  0x45   :  { %552 = vmatpush3.msra.mxu0 %v224_v42 }
  0x46   :  { %553 = vmatprep.subr.mxu0 %v647_v0 }
  0x47   :  { %554 = vmatpush3.msra.mxu0 %v223_v43 }
  0xe7   :  { %v126_v37 = vpop.f32.mrf.mxu0 }
  0xe8   :  { %v127_v38 = vadd.f32 %v413_v36, %v126_v37 }
  0xe9   :  { %v487_v39 = vpop.f32.mrf.mxu0 }
  0xea   :  { %v130_v40 = vmax.f32 %v127_v38, 0.0 }
  0xec   :  { %521 = vmatmul.mubr.f32.vlgmr.msra.gmra.mxu1 %v130_v40 }
  0xed   :  { %590 = vmatprep.mubr.msk.f32.mxu1 %vm648_vm0, %v647_v0  ;;  %559 = vmatpush3.msra.mxu1 %v330_v44 }
  0xee   :  { %560 = vmatprep.subr.mxu1 %v647_v0 }
  0xef   :  { %561 = vmatpush3.msra.mxu1 %v329_v45 }
  0xf0   :  { %562 = vmatprep.subr.mxu1 %v647_v0 }
  0xf1   :  { %563 = vmatpush3.msra.mxu1 %v328_v46 }
  0xf2   :  { %564 = vmatprep.subr.mxu1 %v647_v0 }
  0xf3   :  { %565 = vmatpush3.msra.mxu1 %v327_v47 }
  0xf4   :  { %566 = vmatprep.subr.mxu1 %v647_v0 }
  0xf5   :  { %567 = vmatpush3.msra.mxu1 %v326_v48 }
  0xf6   :  { %568 = vmatprep.subr.mxu1 %v647_v0 }
  0xf7   :  { %569 = vmatpush3.msra.mxu1 %v325_v49 }
  0xf8   :  { %570 = vmatprep.subr.mxu1 %v647_v0 }
  0xf9   :  { %571 = vmatpush3.msra.mxu1 %v324_v50 }
  0xfa   :  { %572 = vmatprep.subr.mxu1 %v647_v0 }
  0xfb   :  { %573 = vmatpush3.msra.mxu1 %v323_v51 }
  0xfc   :  { %574 = vmatprep.subr.mxu1 %v647_v0 }
  0xfd   :  { %575 = vmatpush3.msra.mxu1 %v322_v52 }
  0xfe   :  { %576 = vmatprep.subr.mxu1 %v647_v0 }
  0xff   :  { %577 = vmatpush3.msra.mxu1 %v321_v53 }
 0x100   :  { %578 = vmatprep.subr.mxu1 %v647_v0 }
 0x101   :  { %579 = vmatpush3.msra.mxu1 %v320_v54 }
 0x102   :  { %580 = vmatprep.subr.mxu1 %v647_v0 }
 0x103   :  { %581 = vmatpush3.msra.mxu1 %v319_v55 }
 0x104   :  { %582 = vmatprep.subr.mxu1 %v647_v0 }
 0x105   :  { %583 = vmatpush3.msra.mxu1 %v318_v56 }
 0x106   :  { %584 = vmatprep.subr.mxu1 %v647_v0 }
 0x107   :  { %585 = vmatpush3.msra.mxu1 %v317_v62 }
 0x108   :  { %586 = vmatprep.subr.mxu1 %v647_v0 }
 0x109   :  { %587 = vmatpush3.msra.mxu1 %v316_v63 }
 0x10a   :  { %588 = vmatprep.subr.mxu1 %v647_v0 }
 0x10b   :  { %589 = vmatpush3.msra.mxu1 %v315_v1 }
 0x1ac   :  { %v218_v58 = vpop.f32.mrf.mxu1 }
 0x1ad   :  { %v219_v59 = vadd.f32 %v415_v57, %v218_v58 }
 0x1ae   :  { %v522_v60 = vpop.f32.mrf.mxu1 }
 0x1af   :  { %v222_v61 = vmax.f32 %v219_v59, 0.0 }
 0x1b1   :  { %556 = vmatmul.mubr.f32.vlgmr.msra.gmra.mxu0 %v222_v61 }
 0x271   :  { %v310_v3 = vpop.f32.mrf.mxu0 }
 0x272   :  { %v311_v4 = vadd.f32 %v416_v2, %v310_v3 }
 0x273   :  { %v557_v5 = vpop.f32.mrf.mxu0 }
 0x274   :  { %v314_v6 = vmax.f32 %v311_v4, 0.0 }
 0x276   :  { %591 = vmatmul.mubr.f32.vlgmr.msra.gmra.mxu1 %v314_v6 }
 0x336   :  { %v402_v8 = vpop.f32.mrf.mxu1 }
 0x337   :  { %v403_v9 = vadd.f32 %v417_v7, %v402_v8 }
 0x338   :  { %v592_v10 = vpop.f32.mrf.mxu1 }
 0x339   :  { %406 = vst [vmem:[%s763_s4] sm:$0xff] %v403_v9 }
 0x33a   :  { %411 = vsyncpa [#allocation3], 1 }
 0x33b   :  { %412 = vsyncpa [#allocation5], 1 }

</bundles_post_ra>
